<compile_context>
chip_gen: v7x
topology: tpu7x:2x2x1
jax: 0.10.0
libtpu: 0.0.40
codegen_flags: <defaults>
</compile_context>

<pallas_src>
import functools

import jax
import jax.numpy as jnp
from jax.experimental import pallas as pl
from jax.experimental.pallas import tpu as pltpu


def _round_up(x, m):
    return ((x + m - 1) // m) * m


def _vmem_budget_bytes():
    """Generation-aware scoped-VMEM budget (~60% of per-core VMEM capacity)."""
    cap = 64 * 1024 * 1024  # conservative fallback (v7x per-TC VMEM)
    try:
        cap = int(pltpu.get_tpu_info().vmem_capacity_bytes)
    except Exception:
        pass
    return int(cap * 0.6)


def _ce_kernel(logits_ref, labels_ref, out_ref, *,
               label_smoothing, num_valid, tile_n, num_classes):
    """One (tile_n, C) logits tile -> one f32 partial sum of the smoothed loss."""
    i = pl.program_id(0)

    x = logits_ref[...].astype(jnp.float32)            # (TILE_N, C)
    labels = labels_ref[...]                            # (TILE_N, 1) int32

    # Stable log-sum-exp over the class (lane) axis; logprobs never materialized.
    m = jnp.max(x, axis=-1, keepdims=True)              # (TILE_N, 1)
    shifted = x - m                                      # (TILE_N, C)
    lse = jnp.log(jnp.sum(jnp.exp(shifted), axis=-1, keepdims=True))  # (TILE_N, 1)

    # Fused label-gather + mean(logprobs) as a single weighted lane reduction:
    #   loss = (1-s)*(lse - shifted[label]) + s*(lse - mean(shifted))
    #        = lse - sum_j shifted_j * w_j,   w_j = s/C + (1-s)*[j == label]
    confidence = 1.0 - label_smoothing
    base = label_smoothing / num_classes
    col = jax.lax.broadcasted_iota(jnp.int32, x.shape, 1)            # (TILE_N, C)
    w = jnp.where(col == labels, confidence + base, base)            # (TILE_N, C)
    loss = lse - jnp.sum(shifted * w, axis=-1, keepdims=True)        # (TILE_N, 1)

    # Ragged last tile: rows past the true batch read out-of-bounds garbage;
    # the select confines it (mask AFTER per-row math, BEFORE the sum).
    row = jax.lax.broadcasted_iota(jnp.int32, loss.shape, 0) + i * tile_n
    loss = jnp.where(row < num_valid, loss, 0.0)

    # Per-tile partial sum; each grid step owns its own (1,1,1) output block,
    # so the batch axis can be "parallel" (megacore-friendly on v7x).
    out_ref[...] = jnp.sum(loss, axis=0, keepdims=True).reshape(1, 1, 1)


def cross_entropy_loss(logits, labels, label_smoothing=0.0, reduction='mean',
                       tile_n=None):
    """Pallas TPU implementation of the label-smoothing CrossEntropyLoss forward."""
    N, C = logits.shape
    if reduction == 'mean':
        inv_scale = 1.0 / (float(N) * float(N))   # mean(loss)/N  (module quirk)
    elif reduction == 'sum':
        inv_scale = 1.0 / float(N)                # sum(loss)/N   (module quirk)
    else:
        raise ValueError('No valid reduction')

    itemsize = jnp.dtype(logits.dtype).itemsize
    sublane = max(8, 32 // max(1, itemsize))       # 8 (f32), 16 (bf16), 32 (int8)

    vmem_budget = _vmem_budget_bytes()

    if tile_n is None:
        # ~8 MiB of logits per tile (past the measured HBM-roofline knee),
        # capped so 2x double-buffered input tiles + ~5 f32 full-tile temps
        # (shifted / exp / iota / weights / product) fit the VMEM budget.
        target_bytes = 8 * 1024 * 1024
        per_row_bytes = C * (2 * itemsize + 5 * 4)
        rows_by_vmem = max(sublane, (vmem_budget - (2 << 20)) // max(1, per_row_bytes))
        rows = max(sublane, target_bytes // max(1, C * itemsize))
        rows = min(rows, rows_by_vmem, 4096, _round_up(N, sublane))
        tile_n = max(sublane, (rows // sublane) * sublane)
    else:
        tile_n = max(sublane, _round_up(int(tile_n), sublane))

    num_tiles = pl.cdiv(N, tile_n)

    # No wrapper-side padding of logits/labels: the ragged last tile is handled
    # in-kernel, so we never touch the full N x C tensor outside the kernel.
    labels2d = labels.reshape(N, 1).astype(jnp.int32)

    kernel = functools.partial(
        _ce_kernel,
        label_smoothing=float(label_smoothing),
        num_valid=N,
        tile_n=tile_n,
        num_classes=C,
    )

    partials = pl.pallas_call(
        kernel,
        out_shape=jax.ShapeDtypeStruct((num_tiles, 1, 1), jnp.float32),
        grid_spec=pltpu.PrefetchScalarGridSpec(
            num_scalar_prefetch=0,
            grid=(num_tiles,),
            in_specs=[
                pl.BlockSpec((tile_n, C), lambda i: (i, 0)),
                pl.BlockSpec((tile_n, 1), lambda i: (i, 0)),
            ],
            out_specs=pl.BlockSpec((1, 1, 1), lambda i: (i, 0, 0)),
        ),
        compiler_params=pltpu.CompilerParams(
            dimension_semantics=("parallel",),      # per-tile partials -> no accumulator
            vmem_limit_bytes=int(vmem_budget),
        ),
    )(logits, labels2d)

    # Tiny final reduction + the module's scaling, outside the kernel.
    return jnp.sum(partials) * jnp.float32(inv_scale)


def _reference(logits, labels, label_smoothing=0.0, reduction='mean'):
    """Pure-JAX reference mirroring the PyTorch forward exactly."""
    confidence = 1.0 - label_smoothing
    logprobs = jax.nn.log_softmax(logits.astype(jnp.float32), axis=-1)
    nll_loss = -jnp.take_along_axis(logprobs, labels[:, None], axis=-1)[:, 0]
    smooth_loss = -jnp.mean(logprobs, axis=-1)
    loss = confidence * nll_loss + label_smoothing * smooth_loss
    num_batch = loss.shape[0]
    if reduction == 'mean':
        return jnp.mean(loss) / num_batch
    elif reduction == 'sum':
        return jnp.sum(loss) / num_batch
    raise ValueError('No valid reduction')


if __name__ == "__main__":
    key = jax.random.PRNGKey(0)
    k_logits, k_labels = jax.random.split(key)

    N, C = 20, 40  # small, non-multiple-of-8 batch to exercise ragged-tile masking
    logits = jax.random.normal(k_logits, (N, C), dtype=jnp.float32)
    labels = jax.random.randint(k_labels, (N,), 0, C, dtype=jnp.int32)

    # Forced small tile -> multi-step grid with a ragged (masked) last tile.
    for reduction in ('mean', 'sum'):
        for smoothing in (0.0, 0.1):
            out = jax.block_until_ready(
                cross_entropy_loss(logits, labels, smoothing, reduction, tile_n=8))
            ref = _reference(logits, labels, smoothing, reduction)
            assert jnp.allclose(out, ref, rtol=1e-5, atol=1e-6), (reduction, smoothing, out, ref)

    # Auto tile-size path (single tile for this small shape).
    out = jax.block_until_ready(cross_entropy_loss(logits, labels, 0.1, 'mean'))
    ref = _reference(logits, labels, 0.1, 'mean')
    assert jnp.allclose(out, ref, rtol=1e-5, atol=1e-6), (out, ref)

    # bf16 input path (kernel casts to f32 in-register).
    out = jax.block_until_ready(
        cross_entropy_loss(logits.astype(jnp.bfloat16), labels, 0.1, 'mean'))
    ref = _reference(logits.astype(jnp.bfloat16), labels, 0.1, 'mean')
    assert jnp.allclose(out, ref, rtol=1e-2, atol=1e-4), (out, ref)

    print("KERNEL_OK")
</pallas_src>

<mosaic_0001>
module attributes {stable_mosaic.version = 11 : i64} {
  func.func @_ce_kernel(%arg0: i32, %arg1: memref<8x40xf32, #tpu.memory_space<vmem>>, %arg2: memref<8x1xi32, #tpu.memory_space<vmem>>, %arg3: memref<1x1x1xf32, #tpu.memory_space<vmem>>) attributes {dimension_semantics = [#tpu.dimension_semantics<parallel>], iteration_bounds = array<i64: 3>, scalar_prefetch = 0 : i64, scratch_operands = 0 : i64, tpu.core_type = #tpu.core_type<tc>, window_params = [{transform_indices = @transform_0, window_bounds = array<i64: 8, 40>}, {transform_indices = @transform_1, window_bounds = array<i64: 8, 1>}, {transform_indices = @transform_2, window_bounds = array<i64: 1, 1, 1>}]} {
    %c0 = arith.constant 0 : index
    %c0_0 = arith.constant 0 : index
    %0 = vector.load %arg1[%c0, %c0_0] : memref<8x40xf32, #tpu.memory_space<vmem>>, vector<8x40xf32>
    %c0_1 = arith.constant 0 : index
    %c0_2 = arith.constant 0 : index
    %1 = vector.load %arg2[%c0_1, %c0_2] : memref<8x1xi32, #tpu.memory_space<vmem>>, vector<8x1xi32>
    %cst = arith.constant dense<0xFF800000> : vector<8xf32>
    %2 = vector.multi_reduction <maximumf>, %0, %cst [1] : vector<8x40xf32> to vector<8xf32>
    %3 = vector.shape_cast %2 : vector<8xf32> to vector<8x1xf32>
    %4 = vector.broadcast %3 : vector<8x1xf32> to vector<8x40xf32>
    %5 = arith.subf %0, %4 : vector<8x40xf32>
    %6 = math.exp %5 : vector<8x40xf32>
    %cst_3 = arith.constant dense<0.000000e+00> : vector<8xf32>
    %7 = vector.multi_reduction <add>, %6, %cst_3 [1] : vector<8x40xf32> to vector<8xf32>
    %8 = vector.shape_cast %7 : vector<8xf32> to vector<8x1xf32>
    %9 = math.log %8 : vector<8x1xf32>
    %10 = tpu.iota {dimensions = array<i32: 1>} : vector<8x40xi32>
    %11 = vector.broadcast %1 : vector<8x1xi32> to vector<8x40xi32>
    %12 = arith.cmpi eq, %10, %11 : vector<8x40xi32>
    %cst_4 = arith.constant 1.000000e+00 : f32
    %cst_5 = arith.constant 0.000000e+00 : f32
    %13 = vector.broadcast %cst_4 : f32 to vector<8x40xf32>
    %14 = vector.broadcast %cst_5 : f32 to vector<8x40xf32>
    %15 = arith.select %12, %13, %14 : vector<8x40xi1>, vector<8x40xf32>
    %16 = arith.mulf %5, %15 : vector<8x40xf32>
    %cst_6 = arith.constant dense<0.000000e+00> : vector<8xf32>
    %17 = vector.multi_reduction <add>, %16, %cst_6 [1] : vector<8x40xf32> to vector<8xf32>
    %18 = vector.shape_cast %17 : vector<8xf32> to vector<8x1xf32>
    %19 = arith.subf %9, %18 : vector<8x1xf32>
    %20 = tpu.iota {dimensions = array<i32: 0>} : vector<8x1xi32>
    %c8_i32 = arith.constant 8 : i32
    %21 = arith.muli %arg0, %c8_i32 : i32
    %22 = vector.broadcast %21 : i32 to vector<8x1xi32>
    %23 = arith.addi %20, %22 : vector<8x1xi32>
    %c20_i32 = arith.constant 20 : i32
    %24 = vector.broadcast %c20_i32 : i32 to vector<8x1xi32>
    %25 = arith.cmpi slt, %23, %24 : vector<8x1xi32>
    %cst_7 = arith.constant 0.000000e+00 : f32
    %26 = vector.broadcast %cst_7 : f32 to vector<8x1xf32>
    %27 = arith.select %25, %19, %26 : vector<8x1xi1>, vector<8x1xf32>
    %cst_8 = arith.constant dense<0.000000e+00> : vector<1xf32>
    %28 = vector.multi_reduction <add>, %27, %cst_8 [0] : vector<8x1xf32> to vector<1xf32>
    %29 = vector.shape_cast %28 : vector<1xf32> to vector<1x1xf32>
    %30 = vector.shape_cast %29 : vector<1x1xf32> to vector<1x1x1xf32>
    %c0_9 = arith.constant 0 : index
    %c0_10 = arith.constant 0 : index
    %c0_11 = arith.constant 0 : index
    %31 = vector.load %arg3[%c0_9, %c0_10, %c0_11] : memref<1x1x1xf32, #tpu.memory_space<vmem>>, vector<1x1x1xf32>
    tpu.vector_store %arg3[%c0_9, %c0_10, %c0_11], %30 {strides = array<i32>} : memref<1x1x1xf32, #tpu.memory_space<vmem>>, vector<1x1x1xf32>,
    return
  }
  func.func @transform_0(%arg0: i32) -> (i32, i32) {
    %c0_i32 = arith.constant 0 : i32
    %c0_i32_0 = arith.constant 0 : i32
    return %arg0, %c0_i32 : i32, i32
  }
  func.func @transform_1(%arg0: i32) -> (i32, i32) {
    %c0_i32 = arith.constant 0 : i32
    %c0_i32_0 = arith.constant 0 : i32
    return %arg0, %c0_i32 : i32, i32
  }
  func.func @transform_2(%arg0: i32) -> (i32, i32, i32) {
    %c0_i32 = arith.constant 0 : i32
    %c0_i32_0 = arith.constant 0 : i32
    %c0_i32_1 = arith.constant 0 : i32
    return %arg0, %c0_i32, %c0_i32_0 : i32, i32, i32
  }
}

</mosaic_0001>

<bundles_post_ra>
// kernel: tpu_custom_call.1
= control target key start
LH: loop header
LB: loop body
LE: loop exit
PB: predicated region body
PF: predicated region fallthrough
CT: control target
= control target key end

     0   :  { %s304_s9 = smov 0   ;;  %s336_s0 = inlined_call_operand.vmem [shape: f32[20,40], index: 0, kind: input, shape index: {}]   ;;  %s337_s1 = inlined_call_operand.vmem [shape: s32[20,1], index: 1, kind: input, shape index: {}]   ;;  %s338_s2 = inlined_call_operand.vmem [shape: f32[3,1,1], index: 2, kind: output, shape index: {}]  }
   0x1 LB: > { %s310_s10 = sadd.s32 4294967295, %s285_s9   ;;  %p258_p0 = scmp.ge.s32.totalorder %s285_s9, 1  ;;  %s285_s9 = sphi %s304_s9, %s12_s9  }
   0x2   : > { %p120_p1 = scmp.lt.s32.totalorder %s285_s9, 4 }
   0x4   : > { %p121_p2 = pnand %p258_p0, %p120_p1 }
   0x5   : > { %p143_p3 = scmp.lt.s32.totalorder (!%p121_p2), %s310_s10, 2  ;;  %v287_v0 = vmov (!%p121_p2), 0   ;;  %vm156_vm0 = vcmask (!%p121_p2), 326656   ;;  %v168_v6 = vlaneseq (!%p121_p2)  ;;  %v288_v10 = vmov (!%p121_p2), 0.0   ;;  %s261_s19 = sshll.u32 (!%p121_p2), %s310_s10, 3 }
   0x6   : > { %124 = sbr.rel (%p121_p2) target bundleno = 348 (0x15c), region = 28  ;;  %274 = vset.pattern.permute.xlu0 (!%p121_p2), %v287_v0  ;;  %v183_v18 = vstv (!%p121_p2), %s261_s19  ;;  %vm193_vm3 = vcmask (!%p121_p2), 0  }
   0x7   : > { %v169_v8 = vand.u32 (!%p121_p2), 127, %v168_v6  ;;  %v181_v17 = vshrl.u32 (!%p121_p2), %v168_v6, 7 }
   0x9   : > { %v184_v19 = vadd.s32 (!%p121_p2), %v183_v18, %v181_v17 }
   0xb   : > { %vm185_vm2 = vcmp.lt.s32.totalorder (!%p121_p2), %v184_v19, 20 }
   0xd   : > { %s316_s11 = scalar_select %p143_p3, %s310_s10, 2 }
   0xf   : > { %s259_s12 = sshll.u32 %s316_s11, 3  ;;  %s153_s22 = scalar_lea.vmem %s338_s2, %s316_s11 }
  0x10   : > { %s146_s15 = scalar_lea.vmem %s336_s0, %s259_s12  ;;  %s150_s18 = scalar_lea.vmem %s337_s1, %s259_s12 }
  0x11   : > { %v154_v1 = vld [vmem:[%s146_s15] sm:$0xff] }
  0x12   : > { %v157_v2 = vsel %vm156_vm0, %v154_v1, -inf  ;;  %v155_v3 = vld [vmem:[%s150_s18] sm:$0xff] }
  0x13   : > { %158 = vmax.xlane.f32.xlu0 %v157_v2 }
  0x29   : > { %171 = vperm.xlu0 %274, %v155_v3  }
  0xa0   : > { %v159_v4 = vpop.xlane.xlu0 %158 }
  0xa1   : > { %v160_v5 = vsub.f32 %v154_v1, %v159_v4 }
  0xa3   : > { %v161_v7 = vmul.f32 1.442695, %v160_v5 }
  0xa5   : > { %275 = vpow2.f32 %v161_v7 }
  0xa8   : > { %v172_v9 = vpop.permute.xlu0 %171 }
  0xa9   : > { %vm173_vm1 = vcmp.eq.s32.totalorder %v169_v8, %v172_v9 }
  0xaa   : > { %v174_v11 = vsel %vm173_vm1, 1.0, %v288_v10 }
  0xab   : > { %v175_v14 = vmul.f32 %v174_v11, %v160_v5 }
  0xad   : > { %v176_v15 = vsel %vm156_vm0, %v175_v14, 0.0 }
  0xaf   : > { %v276_v12 = vpop.eup %275 }
  0xb0   : > { %v163_v13 = vsel %vm156_vm0, %v276_v12, 0.0 }
  0xb1   : > { %164 = vadd.xlane.f32.xlu1 %v163_v13 }
  0xb5   : > { %177 = vadd.xlane.f32.xlu1 %v176_v15 }
 0x13e   : > { %v165_v16 = vpop.xlane.xlu1 %164 }
 0x13f   : > { %277 = vlog2.f32 %v165_v16 }
 0x142   : > { %v178_v22 = vpop.xlane.xlu1 %177 }
 0x149   : > { %v278_v20 = vpop.eup %277 }
 0x14a   : > { %v167_v21 = vmul.f32 0.6931472, %v278_v20 }
 0x14c   : > { %v179_v23 = vsub.f32 %v167_v21, %v178_v22 }
 0x14e   : > { %v186_v24 = vsel %vm185_vm2, %v179_v23, 0.0 }
 0x14f   : > { %v187_v25 = vrot.slane %v186_v24, 4 }
 0x151   : > { %v188_v26 = vadd.f32 %v187_v25, %v186_v24 }
 0x153   : > { %v189_v27 = vrot.slane %v188_v26, 2 }
 0x155   : > { %v190_v28 = vadd.f32 %v189_v27, %v188_v26 }
 0x157   : > { %v191_v29 = vrot.slane %v190_v28, 1 }
 0x159   : > { %v192_v30 = vadd.f32 %v191_v29, %v190_v28 }
 0x15b   : > { %194 = vst.msk [vmem:[%s153_s22] sm:$0x1] %vm193_vm3, %v192_v30 }
 0x15c PF: > { %s12_s9 = sadd.s32 1, %s285_s9  }
 0x15d   : > { %p9_p4 = scmp.ge.s32.totalorder %s12_s9, 5  }
 0x15f   :  { %11 = sbr.rel (!%p9_p4) target bundleno = 1 (0x1), region = 61 }

</bundles_post_ra>
